<compile_context>
chip_gen: v5e
topology: v5e:2x2
jax: 0.10.0
libtpu: 0.0.40
codegen_flags: <defaults>
</compile_context>

<pallas_src>
from functools import partial

import jax
import jax.numpy as jnp
from jax import lax
from jax.experimental import pallas as pl
from jax.experimental.pallas import tpu as pltpu


def lstm_fused_kernel(ids_ref, tproj_ref, whh_ref, wout_ref, bout_ref,
                      out_ref, *, T, Bp):
    """One-hot embedding+input-proj, unrolled LSTM recurrence, output proj.

    ids_ref  : VMEM (T*Bp, 1) int32  time-major token ids (row = t*Bp + b)
    tproj_ref: VMEM (V, 4H)  emb @ W_ih + (b_ih + b_hh), PyTorch gate order i,f,g,o
    whh_ref  : VMEM (H, 4H)  hidden->gate weights
    wout_ref : VMEM (1, H)   output projection weight (PyTorch Linear layout)
    bout_ref : VMEM (1, 1)   output projection bias
    out_ref  : VMEM (T*Bp, 1) time-major predictions
    """
    V, fourH = tproj_ref.shape
    H = fourH // 4
    TB = T * Bp

    # Hoist all weight reads out of the recurrence.
    tproj = tproj_ref[...]                              # (V, 4H)
    whh = whh_ref[...]                                  # (H, 4H)
    wout = wout_ref[...]                                # (1, H)
    bout = bout_ref[...]                                # (1, 1)

    # ---- fused embedding gather + input projection: one-hot @ table -------
    ids = ids_ref[...]                                  # (TB, 1) int32
    vocab_iota = lax.broadcasted_iota(jnp.int32, (TB, V), 1)
    one_hot = (vocab_iota == ids).astype(jnp.float32)   # (TB, V)
    gates_x = jnp.dot(one_hot, tproj,
                      preferred_element_type=jnp.float32)  # (TB, 4H), bias folded

    # ---- constant lane masks for the single-tanh activation trick ---------
    # sigmoid(x) = 0.5*tanh(x/2) + 0.5 on i/f/o lanes; plain tanh on g lanes.
    lane = lax.broadcasted_iota(jnp.int32, (1, fourH), 1)
    is_g = (lane >= 2 * H) & (lane < 3 * H)
    pre = jnp.where(is_g, 1.0, 0.5).astype(jnp.float32)     # x-scale
    post_a = pre                                            # y-scale
    post_b = jnp.where(is_g, 0.0, 0.5).astype(jnp.float32)  # y-offset

    # ---- fully unrolled recurrence (T static, Bp sublane-aligned) ----------
    h = jnp.zeros((Bp, H), jnp.float32)
    c = jnp.zeros((Bp, H), jnp.float32)
    hs = []
    for t in range(T):
        gates = gates_x[t * Bp:(t + 1) * Bp, :] + jnp.dot(
            h, whh, preferred_element_type=jnp.float32)      # (Bp, 4H)

        act = jnp.tanh(gates * pre) * post_a + post_b        # one EUP push
        i_g = act[:, 0 * H:1 * H]
        f_g = act[:, 1 * H:2 * H]
        g_g = act[:, 2 * H:3 * H]
        o_g = act[:, 3 * H:4 * H]

        c = f_g * c + i_g * g_g
        h = o_g * jnp.tanh(c)
        hs.append(h)

    # ---- output projection: time-major concat + VPU mul + lane reduce -----
    h_all = jnp.concatenate(hs, axis=0)                      # (TB, H), aligned
    y = jnp.sum(h_all * wout, axis=-1, keepdims=True) + bout  # (TB, 1)
    out_ref[...] = y


@jax.jit
def neural_network_forward(X, params):
    """X: (B, T) int token ids -> (B, T, 1) float32 predictions."""
    emb = params["embedding"]                # (V, E)
    wih = params["w_ih"]                     # (E, 4H)
    whh = params["w_hh"]                     # (H, 4H)
    b = params["b"]                          # (1, 4H)  (b_ih + b_hh)
    wout = params["w_out"]                   # (1, H)
    bout = params["b_out"]                   # (1, 1)

    B, T = X.shape
    Bp = max(8, ((B + 7) // 8) * 8)          # pad batch to one f32 sublane tile

    # Fold embedding + input projection + bias into one (V, 4H) table.
    table_proj = jnp.dot(emb, wih, preferred_element_type=jnp.float32) + b

    # Pad batch with token 0 rows, then time-major flatten (row = t*Bp + b).
    Xp = jnp.zeros((Bp, T), jnp.int32).at[:B, :].set(X.astype(jnp.int32))
    ids_tm = Xp.T.reshape(T * Bp, 1)

    vmem = pl.BlockSpec(memory_space=pltpu.MemorySpace.VMEM)

    out_flat = pl.pallas_call(
        partial(lstm_fused_kernel, T=T, Bp=Bp),
        out_shape=jax.ShapeDtypeStruct((T * Bp, 1), jnp.float32),
        in_specs=[vmem, vmem, vmem, vmem, vmem],
        out_specs=vmem,
    )(ids_tm, table_proj, whh, wout, bout)

    # (T*Bp, 1) -> (T, Bp) -> keep real batch -> (B, T, 1). Trivial XLA work.
    y = out_flat.reshape(T, Bp)[:, :B].T[..., None]
    return y


def make_params(key, dictionary_size, embedding_size, num_hiddens):
    kE, kih, khh, kb1, kb2, kwo, kbo = jax.random.split(key, 7)
    H = num_hiddens
    s = 1.0 / jnp.sqrt(H)
    params = {
        "embedding": jax.random.normal(
            kE, (dictionary_size, embedding_size), jnp.float32),
        # PyTorch LSTM stores W_ih as (4H, E); we keep the transposed (E, 4H),
        # gate order i, f, g, o.
        "w_ih": jax.random.uniform(kih, (embedding_size, 4 * H), jnp.float32, -s, s),
        "w_hh": jax.random.uniform(khh, (H, 4 * H), jnp.float32, -s, s),
        # b = b_ih + b_hh folded into one vector.
        "b": (jax.random.uniform(kb1, (1, 4 * H), jnp.float32, -s, s)
              + jax.random.uniform(kb2, (1, 4 * H), jnp.float32, -s, s)),
        # nn.Linear(H, 1).weight is (1, H); bias kept as (1, 1).
        "w_out": jax.random.uniform(kwo, (1, H), jnp.float32, -s, s),
        "b_out": jax.random.uniform(kbo, (1, 1), jnp.float32, -s, s),
    }
    return params


if __name__ == "__main__":
    dictionary_size = 32
    embedding_size = 16
    num_hiddens = 32
    batch, seq = 2, 8

    key = jax.random.PRNGKey(0)
    kp, kx = jax.random.split(key)
    params = make_params(kp, dictionary_size, embedding_size, num_hiddens)
    X = jax.random.randint(kx, (batch, seq), 0, dictionary_size, dtype=jnp.int32)

    preds = neural_network_forward(X, params)
    jax.block_until_ready(preds)

    assert preds.shape == (batch, seq, 1)
    assert bool(jnp.all(jnp.isfinite(preds)))
    print("KERNEL_OK")
</pallas_src>

<mosaic_0001>
module attributes {stable_mosaic.version = 11 : i64} {
  func.func @lstm_fused_kernel(%arg0: memref<64x1xi32, #tpu.memory_space<vmem>>, %arg1: memref<32x128xf32, #tpu.memory_space<vmem>>, %arg2: memref<32x128xf32, #tpu.memory_space<vmem>>, %arg3: memref<1x32xf32, #tpu.memory_space<vmem>>, %arg4: memref<1x1xf32, #tpu.memory_space<vmem>>, %arg5: memref<64x1xf32, #tpu.memory_space<vmem>>) attributes {dimension_semantics = [], scalar_prefetch = 0 : i64, scratch_operands = 0 : i64, tpu.core_type = #tpu.core_type<tc>} {
    %c0 = arith.constant 0 : index
    %c0_0 = arith.constant 0 : index
    %0 = vector.load %arg1[%c0, %c0_0] : memref<32x128xf32, #tpu.memory_space<vmem>>, vector<32x128xf32>
    %c0_1 = arith.constant 0 : index
    %c0_2 = arith.constant 0 : index
    %1 = vector.load %arg2[%c0_1, %c0_2] : memref<32x128xf32, #tpu.memory_space<vmem>>, vector<32x128xf32>
    %c0_3 = arith.constant 0 : index
    %c0_4 = arith.constant 0 : index
    %2 = vector.load %arg3[%c0_3, %c0_4] : memref<1x32xf32, #tpu.memory_space<vmem>>, vector<1x32xf32>
    %c0_5 = arith.constant 0 : index
    %c0_6 = arith.constant 0 : index
    %3 = vector.load %arg4[%c0_5, %c0_6] : memref<1x1xf32, #tpu.memory_space<vmem>>, vector<1x1xf32>
    %c0_7 = arith.constant 0 : index
    %c0_8 = arith.constant 0 : index
    %4 = vector.load %arg0[%c0_7, %c0_8] : memref<64x1xi32, #tpu.memory_space<vmem>>, vector<64x1xi32>
    %5 = tpu.iota {dimensions = array<i32: 1>} : vector<64x32xi32>
    %6 = vector.broadcast %4 : vector<64x1xi32> to vector<64x32xi32>
    %7 = arith.cmpi eq, %5, %6 : vector<64x32xi32>
    %8 = arith.extui %7 : vector<64x32xi1> to vector<64x32xi32>
    %9 = arith.sitofp %8 : vector<64x32xi32> to vector<64x32xf32>
    %cst = arith.constant dense<0.000000e+00> : vector<64x128xf32>
    %10 = tpu.matmul %9, %0, %cst {dimension_numbers = #tpu.dot_dimension_numbers<[1], [0], [0], [1], [0, 0, 1, 1], [], []>} : vector<64x32xf32>, vector<32x128xf32>, vector<64x128xf32> -> vector<64x128xf32>
    %11 = tpu.iota {dimensions = array<i32: 1>} : vector<1x128xi32>
    %c64_i32 = arith.constant 64 : i32
    %12 = vector.broadcast %c64_i32 : i32 to vector<1x128xi32>
    %13 = arith.cmpi sge, %11, %12 : vector<1x128xi32>
    %c96_i32 = arith.constant 96 : i32
    %14 = vector.broadcast %c96_i32 : i32 to vector<1x128xi32>
    %15 = arith.cmpi slt, %11, %14 : vector<1x128xi32>
    %16 = arith.andi %13, %15 : vector<1x128xi1>
    %cst_9 = arith.constant 1.000000e+00 : f32
    %cst_10 = arith.constant 5.000000e-01 : f32
    %17 = vector.broadcast %cst_9 : f32 to vector<1x128xf32>
    %18 = vector.broadcast %cst_10 : f32 to vector<1x128xf32>
    %19 = arith.select %16, %17, %18 : vector<1x128xi1>, vector<1x128xf32>
    %cst_11 = arith.constant 0.000000e+00 : f32
    %cst_12 = arith.constant 5.000000e-01 : f32
    %20 = vector.broadcast %cst_11 : f32 to vector<1x128xf32>
    %21 = vector.broadcast %cst_12 : f32 to vector<1x128xf32>
    %22 = arith.select %16, %20, %21 : vector<1x128xi1>, vector<1x128xf32>
    %cst_13 = arith.constant 0.000000e+00 : f32
    %23 = vector.broadcast %cst_13 : f32 to vector<8x32xf32>
    %cst_14 = arith.constant 0.000000e+00 : f32
    %24 = vector.broadcast %cst_14 : f32 to vector<8x32xf32>
    %25 = vector.extract_strided_slice %10 {offsets = [0, 0], sizes = [8, 128], strides = [1, 1]} : vector<64x128xf32> to vector<8x128xf32>
    %cst_15 = arith.constant dense<0.000000e+00> : vector<8x128xf32>
    %26 = tpu.matmul %23, %1, %cst_15 {dimension_numbers = #tpu.dot_dimension_numbers<[1], [0], [0], [1], [0, 0, 1, 1], [], []>} : vector<8x32xf32>, vector<32x128xf32>, vector<8x128xf32> -> vector<8x128xf32>
    %27 = arith.addf %25, %26 : vector<8x128xf32>
    %28 = vector.broadcast %19 : vector<1x128xf32> to vector<8x128xf32>
    %29 = arith.mulf %27, %28 : vector<8x128xf32>
    %30 = math.tanh %29 : vector<8x128xf32>
    %31 = vector.broadcast %19 : vector<1x128xf32> to vector<8x128xf32>
    %32 = arith.mulf %30, %31 : vector<8x128xf32>
    %33 = vector.broadcast %22 : vector<1x128xf32> to vector<8x128xf32>
    %34 = arith.addf %32, %33 : vector<8x128xf32>
    %35 = vector.extract_strided_slice %34 {offsets = [0, 0], sizes = [8, 32], strides = [1, 1]} : vector<8x128xf32> to vector<8x32xf32>
    %36 = vector.extract_strided_slice %34 {offsets = [0, 32], sizes = [8, 32], strides = [1, 1]} : vector<8x128xf32> to vector<8x32xf32>
    %37 = vector.extract_strided_slice %34 {offsets = [0, 64], sizes = [8, 32], strides = [1, 1]} : vector<8x128xf32> to vector<8x32xf32>
    %38 = vector.extract_strided_slice %34 {offsets = [0, 96], sizes = [8, 32], strides = [1, 1]} : vector<8x128xf32> to vector<8x32xf32>
    %39 = arith.mulf %36, %24 : vector<8x32xf32>
    %40 = arith.mulf %35, %37 : vector<8x32xf32>
    %41 = arith.addf %39, %40 : vector<8x32xf32>
    %42 = math.tanh %41 : vector<8x32xf32>
    %43 = arith.mulf %38, %42 : vector<8x32xf32>
    %44 = vector.extract_strided_slice %10 {offsets = [8, 0], sizes = [8, 128], strides = [1, 1]} : vector<64x128xf32> to vector<8x128xf32>
    %cst_16 = arith.constant dense<0.000000e+00> : vector<8x128xf32>
    %45 = tpu.matmul %43, %1, %cst_16 {dimension_numbers = #tpu.dot_dimension_numbers<[1], [0], [0], [1], [0, 0, 1, 1], [], []>} : vector<8x32xf32>, vector<32x128xf32>, vector<8x128xf32> -> vector<8x128xf32>
    %46 = arith.addf %44, %45 : vector<8x128xf32>
    %47 = vector.broadcast %19 : vector<1x128xf32> to vector<8x128xf32>
    %48 = arith.mulf %46, %47 : vector<8x128xf32>
    %49 = math.tanh %48 : vector<8x128xf32>
    %50 = vector.broadcast %19 : vector<1x128xf32> to vector<8x128xf32>
    %51 = arith.mulf %49, %50 : vector<8x128xf32>
    %52 = vector.broadcast %22 : vector<1x128xf32> to vector<8x128xf32>
    %53 = arith.addf %51, %52 : vector<8x128xf32>
    %54 = vector.extract_strided_slice %53 {offsets = [0, 0], sizes = [8, 32], strides = [1, 1]} : vector<8x128xf32> to vector<8x32xf32>
    %55 = vector.extract_strided_slice %53 {offsets = [0, 32], sizes = [8, 32], strides = [1, 1]} : vector<8x128xf32> to vector<8x32xf32>
    %56 = vector.extract_strided_slice %53 {offsets = [0, 64], sizes = [8, 32], strides = [1, 1]} : vector<8x128xf32> to vector<8x32xf32>
    %57 = vector.extract_strided_slice %53 {offsets = [0, 96], sizes = [8, 32], strides = [1, 1]} : vector<8x128xf32> to vector<8x32xf32>
    %58 = arith.mulf %55, %41 : vector<8x32xf32>
    %59 = arith.mulf %54, %56 : vector<8x32xf32>
    %60 = arith.addf %58, %59 : vector<8x32xf32>
    %61 = math.tanh %60 : vector<8x32xf32>
    %62 = arith.mulf %57, %61 : vector<8x32xf32>
    %63 = vector.extract_strided_slice %10 {offsets = [16, 0], sizes = [8, 128], strides = [1, 1]} : vector<64x128xf32> to vector<8x128xf32>
    %cst_17 = arith.constant dense<0.000000e+00> : vector<8x128xf32>
    %64 = tpu.matmul %62, %1, %cst_17 {dimension_numbers = #tpu.dot_dimension_numbers<[1], [0], [0], [1], [0, 0, 1, 1], [], []>} : vector<8x32xf32>, vector<32x128xf32>, vector<8x128xf32> -> vector<8x128xf32>
    %65 = arith.addf %63, %64 : vector<8x128xf32>
    %66 = vector.broadcast %19 : vector<1x128xf32> to vector<8x128xf32>
    %67 = arith.mulf %65, %66 : vector<8x128xf32>
    %68 = math.tanh %67 : vector<8x128xf32>
    %69 = vector.broadcast %19 : vector<1x128xf32> to vector<8x128xf32>
    %70 = arith.mulf %68, %69 : vector<8x128xf32>
    %71 = vector.broadcast %22 : vector<1x128xf32> to vector<8x128xf32>
    %72 = arith.addf %70, %71 : vector<8x128xf32>
    %73 = vector.extract_strided_slice %72 {offsets = [0, 0], sizes = [8, 32], strides = [1, 1]} : vector<8x128xf32> to vector<8x32xf32>
    %74 = vector.extract_strided_slice %72 {offsets = [0, 32], sizes = [8, 32], strides = [1, 1]} : vector<8x128xf32> to vector<8x32xf32>
    %75 = vector.extract_strided_slice %72 {offsets = [0, 64], sizes = [8, 32], strides = [1, 1]} : vector<8x128xf32> to vector<8x32xf32>
    %76 = vector.extract_strided_slice %72 {offsets = [0, 96], sizes = [8, 32], strides = [1, 1]} : vector<8x128xf32> to vector<8x32xf32>
    %77 = arith.mulf %74, %60 : vector<8x32xf32>
    %78 = arith.mulf %73, %75 : vector<8x32xf32>
    %79 = arith.addf %77, %78 : vector<8x32xf32>
    %80 = math.tanh %79 : vector<8x32xf32>
    %81 = arith.mulf %76, %80 : vector<8x32xf32>
    %82 = vector.extract_strided_slice %10 {offsets = [24, 0], sizes = [8, 128], strides = [1, 1]} : vector<64x128xf32> to vector<8x128xf32>
    %cst_18 = arith.constant dense<0.000000e+00> : vector<8x128xf32>
    %83 = tpu.matmul %81, %1, %cst_18 {dimension_numbers = #tpu.dot_dimension_numbers<[1], [0], [0], [1], [0, 0, 1, 1], [], []>} : vector<8x32xf32>, vector<32x128xf32>, vector<8x128xf32> -> vector<8x128xf32>
    %84 = arith.addf %82, %83 : vector<8x128xf32>
    %85 = vector.broadcast %19 : vector<1x128xf32> to vector<8x128xf32>
    %86 = arith.mulf %84, %85 : vector<8x128xf32>
    %87 = math.tanh %86 : vector<8x128xf32>
    %88 = vector.broadcast %19 : vector<1x128xf32> to vector<8x128xf32>
    %89 = arith.mulf %87, %88 : vector<8x128xf32>
    %90 = vector.broadcast %22 : vector<1x128xf32> to vector<8x128xf32>
    %91 = arith.addf %89, %90 : vector<8x128xf32>
    %92 = vector.extract_strided_slice %91 {offsets = [0, 0], sizes = [8, 32], strides = [1, 1]} : vector<8x128xf32> to vector<8x32xf32>
    %93 = vector.extract_strided_slice %91 {offsets = [0, 32], sizes = [8, 32], strides = [1, 1]} : vector<8x128xf32> to vector<8x32xf32>
    %94 = vector.extract_strided_slice %91 {offsets = [0, 64], sizes = [8, 32], strides = [1, 1]} : vector<8x128xf32> to vector<8x32xf32>
    %95 = vector.extract_strided_slice %91 {offsets = [0, 96], sizes = [8, 32], strides = [1, 1]} : vector<8x128xf32> to vector<8x32xf32>
    %96 = arith.mulf %93, %79 : vector<8x32xf32>
    %97 = arith.mulf %92, %94 : vector<8x32xf32>
    %98 = arith.addf %96, %97 : vector<8x32xf32>
    %99 = math.tanh %98 : vector<8x32xf32>
    %100 = arith.mulf %95, %99 : vector<8x32xf32>
    %101 = vector.extract_strided_slice %10 {offsets = [32, 0], sizes = [8, 128], strides = [1, 1]} : vector<64x128xf32> to vector<8x128xf32>
    %cst_19 = arith.constant dense<0.000000e+00> : vector<8x128xf32>
    %102 = tpu.matmul %100, %1, %cst_19 {dimension_numbers = #tpu.dot_dimension_numbers<[1], [0], [0], [1], [0, 0, 1, 1], [], []>} : vector<8x32xf32>, vector<32x128xf32>, vector<8x128xf32> -> vector<8x128xf32>
    %103 = arith.addf %101, %102 : vector<8x128xf32>
    %104 = vector.broadcast %19 : vector<1x128xf32> to vector<8x128xf32>
    %105 = arith.mulf %103, %104 : vector<8x128xf32>
    %106 = math.tanh %105 : vector<8x128xf32>
    %107 = vector.broadcast %19 : vector<1x128xf32> to vector<8x128xf32>
    %108 = arith.mulf %106, %107 : vector<8x128xf32>
    %109 = vector.broadcast %22 : vector<1x128xf32> to vector<8x128xf32>
    %110 = arith.addf %108, %109 : vector<8x128xf32>
    %111 = vector.extract_strided_slice %110 {offsets = [0, 0], sizes = [8, 32], strides = [1, 1]} : vector<8x128xf32> to vector<8x32xf32>
    %112 = vector.extract_strided_slice %110 {offsets = [0, 32], sizes = [8, 32], strides = [1, 1]} : vector<8x128xf32> to vector<8x32xf32>
    %113 = vector.extract_strided_slice %110 {offsets = [0, 64], sizes = [8, 32], strides = [1, 1]} : vector<8x128xf32> to vector<8x32xf32>
    %114 = vector.extract_strided_slice %110 {offsets = [0, 96], sizes = [8, 32], strides = [1, 1]} : vector<8x128xf32> to vector<8x32xf32>
    %115 = arith.mulf %112, %98 : vector<8x32xf32>
    %116 = arith.mulf %111, %113 : vector<8x32xf32>
    %117 = arith.addf %115, %116 : vector<8x32xf32>
    %118 = math.tanh %117 : vector<8x32xf32>
    %119 = arith.mulf %114, %118 : vector<8x32xf32>
    %120 = vector.extract_strided_slice %10 {offsets = [40, 0], sizes = [8, 128], strides = [1, 1]} : vector<64x128xf32> to vector<8x128xf32>
    %cst_20 = arith.constant dense<0.000000e+00> : vector<8x128xf32>
    %121 = tpu.matmul %119, %1, %cst_20 {dimension_numbers = #tpu.dot_dimension_numbers<[1], [0], [0], [1], [0, 0, 1, 1], [], []>} : vector<8x32xf32>, vector<32x128xf32>, vector<8x128xf32> -> vector<8x128xf32>
    %122 = arith.addf %120, %121 : vector<8x128xf32>
    %123 = vector.broadcast %19 : vector<1x128xf32> to vector<8x128xf32>
    %124 = arith.mulf %122, %123 : vector<8x128xf32>
    %125 = math.tanh %124 : vector<8x128xf32>
    %126 = vector.broadcast %19 : vector<1x128xf32> to vector<8x128xf32>
    %127 = arith.mulf %125, %126 : vector<8x128xf32>
    %128 = vector.broadcast %22 : vector<1x128xf32> to vector<8x128xf32>
    %129 = arith.addf %127, %128 : vector<8x128xf32>
    %130 = vector.extract_strided_slice %129 {offsets = [0, 0], sizes = [8, 32], strides = [1, 1]} : vector<8x128xf32> to vector<8x32xf32>
    %131 = vector.extract_strided_slice %129 {offsets = [0, 32], sizes = [8, 32], strides = [1, 1]} : vector<8x128xf32> to vector<8x32xf32>
    %132 = vector.extract_strided_slice %129 {offsets = [0, 64], sizes = [8, 32], strides = [1, 1]} : vector<8x128xf32> to vector<8x32xf32>
    %133 = vector.extract_strided_slice %129 {offsets = [0, 96], sizes = [8, 32], strides = [1, 1]} : vector<8x128xf32> to vector<8x32xf32>
    %134 = arith.mulf %131, %117 : vector<8x32xf32>
    %135 = arith.mulf %130, %132 : vector<8x32xf32>
    %136 = arith.addf %134, %135 : vector<8x32xf32>
    %137 = math.tanh %136 : vector<8x32xf32>
    %138 = arith.mulf %133, %137 : vector<8x32xf32>
    %139 = vector.extract_strided_slice %10 {offsets = [48, 0], sizes = [8, 128], strides = [1, 1]} : vector<64x128xf32> to vector<8x128xf32>
    %cst_21 = arith.constant dense<0.000000e+00> : vector<8x128xf32>
    %140 = tpu.matmul %138, %1, %cst_21 {dimension_numbers = #tpu.dot_dimension_numbers<[1], [0], [0], [1], [0, 0, 1, 1], [], []>} : vector<8x32xf32>, vector<32x128xf32>, vector<8x128xf32> -> vector<8x128xf32>
    %141 = arith.addf %139, %140 : vector<8x128xf32>
    %142 = vector.broadcast %19 : vector<1x128xf32> to vector<8x128xf32>
    %143 = arith.mulf %141, %142 : vector<8x128xf32>
    %144 = math.tanh %143 : vector<8x128xf32>
    %145 = vector.broadcast %19 : vector<1x128xf32> to vector<8x128xf32>
    %146 = arith.mulf %144, %145 : vector<8x128xf32>
    %147 = vector.broadcast %22 : vector<1x128xf32> to vector<8x128xf32>
    %148 = arith.addf %146, %147 : vector<8x128xf32>
    %149 = vector.extract_strided_slice %148 {offsets = [0, 0], sizes = [8, 32], strides = [1, 1]} : vector<8x128xf32> to vector<8x32xf32>
    %150 = vector.extract_strided_slice %148 {offsets = [0, 32], sizes = [8, 32], strides = [1, 1]} : vector<8x128xf32> to vector<8x32xf32>
    %151 = vector.extract_strided_slice %148 {offsets = [0, 64], sizes = [8, 32], strides = [1, 1]} : vector<8x128xf32> to vector<8x32xf32>
    %152 = vector.extract_strided_slice %148 {offsets = [0, 96], sizes = [8, 32], strides = [1, 1]} : vector<8x128xf32> to vector<8x32xf32>
    %153 = arith.mulf %150, %136 : vector<8x32xf32>
    %154 = arith.mulf %149, %151 : vector<8x32xf32>
    %155 = arith.addf %153, %154 : vector<8x32xf32>
    %156 = math.tanh %155 : vector<8x32xf32>
    %157 = arith.mulf %152, %156 : vector<8x32xf32>
    %158 = vector.extract_strided_slice %10 {offsets = [56, 0], sizes = [8, 128], strides = [1, 1]} : vector<64x128xf32> to vector<8x128xf32>
    %cst_22 = arith.constant dense<0.000000e+00> : vector<8x128xf32>
    %159 = tpu.matmul %157, %1, %cst_22 {dimension_numbers = #tpu.dot_dimension_numbers<[1], [0], [0], [1], [0, 0, 1, 1], [], []>} : vector<8x32xf32>, vector<32x128xf32>, vector<8x128xf32> -> vector<8x128xf32>
    %160 = arith.addf %158, %159 : vector<8x128xf32>
    %161 = vector.broadcast %19 : vector<1x128xf32> to vector<8x128xf32>
    %162 = arith.mulf %160, %161 : vector<8x128xf32>
    %163 = math.tanh %162 : vector<8x128xf32>
    %164 = vector.broadcast %19 : vector<1x128xf32> to vector<8x128xf32>
    %165 = arith.mulf %163, %164 : vector<8x128xf32>
    %166 = vector.broadcast %22 : vector<1x128xf32> to vector<8x128xf32>
    %167 = arith.addf %165, %166 : vector<8x128xf32>
    %168 = vector.extract_strided_slice %167 {offsets = [0, 0], sizes = [8, 32], strides = [1, 1]} : vector<8x128xf32> to vector<8x32xf32>
    %169 = vector.extract_strided_slice %167 {offsets = [0, 32], sizes = [8, 32], strides = [1, 1]} : vector<8x128xf32> to vector<8x32xf32>
    %170 = vector.extract_strided_slice %167 {offsets = [0, 64], sizes = [8, 32], strides = [1, 1]} : vector<8x128xf32> to vector<8x32xf32>
    %171 = vector.extract_strided_slice %167 {offsets = [0, 96], sizes = [8, 32], strides = [1, 1]} : vector<8x128xf32> to vector<8x32xf32>
    %172 = arith.mulf %169, %155 : vector<8x32xf32>
    %173 = arith.mulf %168, %170 : vector<8x32xf32>
    %174 = arith.addf %172, %173 : vector<8x32xf32>
    %175 = math.tanh %174 : vector<8x32xf32>
    %176 = arith.mulf %171, %175 : vector<8x32xf32>
    %177 = tpu.concatenate %43, %62, %81, %100, %119, %138, %157, %176 in 0 : vector<8x32xf32>, vector<8x32xf32>, vector<8x32xf32>, vector<8x32xf32>, vector<8x32xf32>, vector<8x32xf32>, vector<8x32xf32>, vector<8x32xf32> -> vector<64x32xf32>
    %178 = vector.broadcast %2 : vector<1x32xf32> to vector<64x32xf32>
    %179 = arith.mulf %177, %178 : vector<64x32xf32>
    %cst_23 = arith.constant dense<0.000000e+00> : vector<64xf32>
    %180 = vector.multi_reduction <add>, %179, %cst_23 [1] : vector<64x32xf32> to vector<64xf32>
    %181 = vector.shape_cast %180 : vector<64xf32> to vector<64x1xf32>
    %182 = vector.broadcast %3 : vector<1x1xf32> to vector<64x1xf32>
    %183 = arith.addf %181, %182 : vector<64x1xf32>
    %c0_24 = arith.constant 0 : index
    %c0_25 = arith.constant 0 : index
    %184 = vector.load %arg5[%c0_24, %c0_25] : memref<64x1xf32, #tpu.memory_space<vmem>>, vector<64x1xf32>
    tpu.vector_store %arg5[%c0_24, %c0_25], %183 {strides = array<i32>} : memref<64x1xf32, #tpu.memory_space<vmem>>, vector<64x1xf32>,
    return
  }
}

</mosaic_0001>

<bundles_post_ra>
// kernel: neural_network_forward.1
= control target key start
LH: loop header
LB: loop body
LE: loop exit
PB: predicated region body
PF: predicated region fallthrough
CT: control target
= control target key end

     0   :  { %v706_v0 = vmov 0   ;;  %v40_v11 = vlaneseq  ;;  %vm90_vm0 = vcmask 261120   ;;  %v707_v14 = vmov 0.0   ;;  %s710_s12 = smov 32   ;;  %s711_s26 = smov 96   ;;  %s1011_s0 = inlined_call_operand.vmem [shape: s32[64,1], index: 0, kind: input, shape index: {}]   ;;  %s1012_s1 = inlined_call_operand.vmem [shape: f32[32,128], index: 1, kind: input, shape index: {}]   ;;  %s1013_s2 = inlined_call_operand.vmem [shape: f32[32,128], index: 2, kind: input, shape index: {}]   ;;  %s1014_s3 = inlined_call_operand.vmem [shape: f32[1,32], index: 3, kind: input, shape index: {}]   ;;  %s1015_s4 = inlined_call_operand.<no memory space> [shape: f32[1,1], index: 4, kind: input, shape index: {}]   ;;  %s1016_s5 = inlined_call_operand.vmem [shape: f32[64,1], index: 5, kind: output, shape index: {}]  }
   0x1   :  { %669 = vset.pattern.permute.xlu0 %v706_v0  ;;  %v36_v1 = vld [vmem:[%s1011_s0 + $0x20] sm:$0xff]  ;;  %v25_v2 = vld [vmem:[%s1012_s1 + $0x18] sm:$0xff]  ;;  %671 = vset.pattern.permute.xlu1 %v706_v0  ;;  %v24_v3 = vld [vmem:[%s1012_s1 + $0x10] sm:$0xff]  ;;  %v708_v20 = vmov 0.5   ;;  %vm615_vm12 = vcmask 7168  }
   0x2   :  { %55 = vperm.xlu0 %669, %v36_v1   ;;  %651 = vmatpush.msra.mxu1 %v25_v2  ;;  %v23_v4 = vld [vmem:[%s1012_s1 + $0x8] sm:$0xff]  ;;  %v32_v5 = vld [vmem:[%s1011_s0] sm:$0xff]  ;;  %v763_v7 = vld [vmem:[%s1013_s2 + $0x18] sm:$0xff]  ;;  %v792_v12 = vand.u32 127, %v40_v11 }
   0x3   :  { %127 = vmatpush.msra.mxu0 %v25_v2  ;;  %670 = vset.pattern.permute.xlu2 %v706_v0  ;;  %v22_v6 = vld [vmem:[%s1012_s1] sm:$0xff]  ;;  %v768_v8 = vld [vmem:[%s1013_s2 + $0x10] sm:$0xff]  ;;  %v775_v9 = vld [vmem:[%s1013_s2 + $0x8] sm:$0xff] }
   0x4   :  { %654 = vmatpush.msra.mxu1 %v24_v3  ;;  %652 = vmatpush.msra.mxu2 %v25_v2  ;;  %v786_v10 = vld [vmem:[%s1013_s2] sm:$0xff]  ;;  %vm156_vm3 = vcmp.ge.s32.totalorder %v792_v12, 64  ;;  %vm157_vm4 = vcmp.lt.s32.totalorder %v792_v12, 96  ;;  %s709_s2 = smov 64   ;;  %v33_v35 = vld [vmem:[%s1011_s0 + $0x8] sm:$0xff]  ;;  %v38_v52 = vld [vmem:[%s1011_s0 + $0x30] sm:$0xff] }
   0x5   :  { %128 = vmatpush.msra.mxu0 %v24_v3  ;;  %653 = vmatpush.msra.mxu3 %v25_v2  ;;  %vm158_vm5 = vmand %vm156_vm3, %vm157_vm4  ;;  %v37_v36 = vld [vmem:[%s1011_s0 + $0x28] sm:$0xff]  ;;  %v34_v53 = vld [vmem:[%s1011_s0 + $0x10] sm:$0xff] }
   0x6   :  { %657 = vmatpush.msra.mxu1 %v23_v4  ;;  %655 = vmatpush.msra.mxu2 %v24_v3  ;;  %v813_v21 = vsel %vm158_vm5, 1.0, %v708_v20  ;;  %v816_v26 = vsel %vm158_vm5, 0.0, %v708_v20  ;;  %v39_v57 = vld [vmem:[%s1011_s0 + $0x38] sm:$0xff] }
   0x7   :  { %129 = vmatpush.msra.mxu0 %v23_v4  ;;  %656 = vmatpush.msra.mxu3 %v24_v3 }
   0x8   :  { %658 = vmatpush.msra.mxu2 %v23_v4  ;;  %660 = vmatpush.msra.mxu1 %v22_v6 }
   0x9   :  { %659 = vmatpush.msra.mxu3 %v23_v4  ;;  %130 = vmatpush.msra.mxu0 %v22_v6 }
   0xa   :  { %43 = vperm.xlu0 %669, %v32_v5   ;;  %661 = vmatpush.msra.mxu2 %v22_v6 }
   0xb   :  { %662 = vmatpush.msra.mxu3 %v22_v6  ;;  %176 = vmatpush.msrb.mxu1 %v763_v7 }
   0xc   :  { %223 = vmatpush.msrb.mxu2 %v763_v7 }
   0xd   :  { %270 = vmatpush.msrb.mxu3 %v763_v7  ;;  %177 = vmatpush.msrb.mxu1 %v768_v8 }
   0xe   :  { %224 = vmatpush.msrb.mxu2 %v768_v8 }
   0xf   :  { %271 = vmatpush.msrb.mxu3 %v768_v8  ;;  %178 = vmatpush.msrb.mxu1 %v775_v9 }
  0x10   :  { %225 = vmatpush.msrb.mxu2 %v775_v9 }
  0x11   :  { %272 = vmatpush.msrb.mxu3 %v775_v9  ;;  %179 = vmatpush.msrb.mxu1 %v786_v10 }
  0x12   :  { %226 = vmatpush.msrb.mxu2 %v786_v10 }
  0x13   :  { %273 = vmatpush.msrb.mxu3 %v786_v10 }
  0x74   :  { %v56_v13 = vpop.permute.xlu0 %55 }
  0x75   :  { %vm70_vm1 = vcmp.eq.s32.totalorder %v792_v12, %v56_v13 }
  0x76   :  { %v632_v15 = vsel %vm70_vm1, 1.0, %v707_v14 }
  0x77   :  { %640 = vmatmul.msk.f32.vlgmr.msra.gmra.mxu1 %vm90_vm0, %v632_v15 }
  0x78   :  { %317 = vmatpush.msra.mxu1 %v763_v7 }
  0x7a   :  { %318 = vmatpush.msra.mxu1 %v768_v8 }
  0x7c   :  { %v44_v16 = vpop.permute.xlu0 %43  ;;  %319 = vmatpush.msra.mxu1 %v775_v9 }
  0x7d   :  { %vm66_vm2 = vcmp.eq.s32.totalorder %v792_v12, %v44_v16 }
  0x7e   :  { %v628_v17 = vsel %vm66_vm2, 1.0, %v707_v14  ;;  %320 = vmatpush.msra.mxu1 %v786_v10 }
  0x7f   :  { %636 = vmatmul.msk.f32.vlgmr.msra.gmra.mxu0 %vm90_vm0, %v628_v17  ;;  %180 = vmatmul.f32.vlgmr.msrb.gmra.mxu1 %v707_v14  ;;  %v35_v17 = vld [vmem:[%s1011_s0 + $0x18] sm:$0xff] }
  0x80   :  { %458 = vmatpush.msrb.mxu1 %v763_v7 }
  0x82   :  { %459 = vmatpush.msrb.mxu1 %v768_v8 }
  0x84   :  { %460 = vmatpush.msrb.mxu1 %v775_v9 }
  0x86   :  { %461 = vmatpush.msrb.mxu1 %v786_v10 }
  0xf4   :  { %v809_v18 = vpop.f32.mrf.mxu1 }
  0xfc   :  { %v132_v19 = vpop.f32.mrf.mxu0  ;;  %v181_v22 = vpop.f32.mrf.mxu1 }
  0xfd   :  { %v184_v23 = vadd.f32 %v181_v22, %v132_v19 }
  0xff   :  { %v185_v24 = vmul.f32 %v184_v23, %v813_v21 }
 0x101   :  { %674 = vtanh.f32 %v185_v24 }
 0x107   :  { %v675_v25 = vpop.eup %674 }
 0x108   :  { %v187_v27 = vmul.f32 %v675_v25, %v813_v21 }
 0x10a   :  { %v188_v28 = vadd.f32 %v187_v27, %v816_v26 }
 0x10c   :  { %191 = vrot.lane.b32.xlu1 %v188_v28, %s709_s2  ;;  %v189_v31 = vmul.f32 0.0, %v188_v28 }
 0x17e   :  { %v192_v29 = vpop.permute.xlu1 %191 }
 0x17f   :  { %v194_v30 = vmul.f32 %v192_v29, %v188_v28 }
 0x181   :  { %196 = vrot.lane.b32.xlu1 %v194_v30, %s710_s12 }
 0x189   :  { %46 = vperm.xlu1 %671, %v33_v35  }
 0x1f3   :  { %v197_v32 = vpop.permute.xlu1 %196 }
 0x1f4   :  { %v199_v33 = vadd.f32 %v197_v32, %v189_v31 }
 0x1f6   :  { %676 = vtanh.f32 %v199_v33 }
 0x1fb   :  { %v47_v41 = vpop.permute.xlu1 %46 }
 0x1fc   :  { %v677_v34 = vpop.eup %676  ;;  %vm67_vm7 = vcmp.eq.s32.totalorder %v792_v12, %v47_v41 }
 0x1fd   :  { %202 = vrot.lane.b32.xlu2 %v677_v34, %s709_s2  ;;  %v629_v42 = vsel %vm67_vm7, 1.0, %v707_v14 }
 0x1fe   :  { %637 = vmatmul.msk.f32.gmra.mxu0 %vm90_vm0, %v629_v42 }
 0x205   :  { %58 = vperm.xlu2 %670, %v37_v36  }
 0x257   :  { %v203_v37 = vpop.permute.xlu2 %202 }
 0x258   :  { %v829_v38 = vmul.f32 %v203_v37, %v188_v28 }
 0x25a   :  { %207 = vrot.lane.b32.xlu0 %v829_v38, %s710_s12 }
 0x25f   :  { %v59_v39 = vpop.permute.xlu2 %58 }
 0x260   :  { %vm71_vm6 = vcmp.eq.s32.totalorder %v792_v12, %v59_v39 }
 0x261   :  { %v633_v40 = vsel %vm71_vm6, 1.0, %v707_v14 }
 0x262   :  { %641 = vmatmul.msk.f32.vlgmr.msra.gmra.mxu2 %vm90_vm0, %v633_v40 }
 0x263   :  { %364 = vmatpush.msra.mxu2 %v763_v7 }
 0x265   :  { %365 = vmatpush.msra.mxu2 %v768_v8 }
 0x267   :  { %366 = vmatpush.msra.mxu2 %v775_v9 }
 0x269   :  { %367 = vmatpush.msra.mxu2 %v786_v10 }
 0x27b   :  { %v135_v45 = vpop.f32.mrf.mxu0 }
 0x2cc   :  { %v208_v43 = vpop.permute.xlu0 %207 }
 0x2cd   :  { %644 = vmatmul.msk.f32.vlgmr.msrb.gmra.mxu2 %vm90_vm0, %v208_v43 }
 0x2ce   :  { %505 = vmatpush.msrb.mxu2 %v763_v7 }
 0x2d0   :  { %506 = vmatpush.msrb.mxu2 %v768_v8 }
 0x2d2   :  { %507 = vmatpush.msrb.mxu2 %v775_v9 }
 0x2d4   :  { %508 = vmatpush.msrb.mxu2 %v786_v10 }
 0x2e5   :  { %v848_v44 = vpop.f32.mrf.mxu2 }
 0x350   :  { %v228_v46 = vpop.f32.mrf.mxu2 }
 0x351   :  { %v231_v47 = vadd.f32 %v228_v46, %v135_v45 }
 0x353   :  { %v232_v48 = vmul.f32 %v231_v47, %v813_v21 }
 0x355   :  { %678 = vtanh.f32 %v232_v48 }
 0x35b   :  { %v679_v49 = vpop.eup %678 }
 0x35c   :  { %v234_v50 = vmul.f32 %v679_v49, %v813_v21 }
 0x35e   :  { %v235_v51 = vadd.f32 %v234_v50, %v816_v26 }
 0x360   :  { %238 = vrot.lane.b32.xlu2 %v235_v51, %s709_s2  ;;  %v236_v61 = vmul.f32 %v235_v51, %v199_v33 }
 0x368   :  { %61 = vperm.xlu2 %670, %v38_v52  }
 0x370   :  { %49 = vperm.xlu2 %670, %v34_v53  }
 0x3ba   :  { %v239_v54 = vpop.permute.xlu2 %238 }
 0x3bb   :  { %v241_v55 = vmul.f32 %v239_v54, %v235_v51 }
 0x3bd   :  { %243 = vrot.lane.b32.xlu0 %v241_v55, %s710_s12 }
 0x3c2   :  { %v62_v56 = vpop.permute.xlu2 %61 }
 0x3c3   :  { %vm72_vm8 = vcmp.eq.s32.totalorder %v792_v12, %v62_v56 }
 0x3c4   :  { %v634_v58 = vsel %vm72_vm8, 1.0, %v707_v14 }
 0x3c5   :  { %64 = vperm.xlu0 %669, %v39_v57   ;;  %642 = vmatmul.msk.f32.vlgmr.msra.gmra.mxu3 %vm90_vm0, %v634_v58 }
 0x3c6   :  { %411 = vmatpush.msra.mxu3 %v763_v7 }
 0x3c8   :  { %412 = vmatpush.msra.mxu3 %v768_v8 }
 0x3ca   :  { %v50_v59 = vpop.permute.xlu2 %49  ;;  %413 = vmatpush.msra.mxu3 %v775_v9 }
 0x3cb   :  { %vm68_vm9 = vcmp.eq.s32.totalorder %v792_v12, %v50_v59 }
 0x3cc   :  { %v630_v60 = vsel %vm68_vm9, 1.0, %v707_v14  ;;  %414 = vmatpush.msra.mxu3 %v786_v10 }
 0x3cd   :  { %638 = vmatmul.msk.f32.gmra.mxu0 %vm90_vm0, %v630_v60 }
 0x42f   :  { %v244_v62 = vpop.permute.xlu0 %243 }
 0x430   :  { %v246_v63 = vadd.f32 %v244_v62, %v236_v61 }
 0x432   :  { %680 = vtanh.f32 %v246_v63 }
 0x437   :  { %v65_v0 = vpop.permute.xlu0 %64 }
 0x438   :  { %v681_v1 = vpop.eup %680  ;;  %vm73_vm10 = vcmp.eq.s32.totalorder %v792_v12, %v65_v0 }
 0x439   :  { %v635_v2 = vsel %vm73_vm10, 1.0, %v707_v14  ;;  %249 = vrot.lane.b32.xlu1 %v681_v1, %s709_s2 }
 0x43a   :  { %643 = vmatmul.msk.f32.gmra.mxu3 %vm90_vm0, %v635_v2 }
 0x448   :  { %v883_v6 = vpop.f32.mrf.mxu3 }
 0x44a   :  { %v138_v8 = vpop.f32.mrf.mxu0 }
 0x4ab   :  { %v250_v3 = vpop.permute.xlu1 %249 }
 0x4ac   :  { %v878_v4 = vmul.f32 %v250_v3, %v235_v51 }
 0x4ae   :  { %254 = vrot.lane.b32.xlu1 %v878_v4, %s710_s12 }
 0x4bd   :  { %v885_v7 = vpop.f32.mrf.mxu3 }
 0x520   :  { %v255_v5 = vpop.permute.xlu1 %254 }
 0x521   :  { %645 = vmatmul.msk.f32.vlgmr.msrb.gmra.mxu3 %vm90_vm0, %v255_v5 }
 0x5a4   :  { %v275_v9 = vpop.f32.mrf.mxu3 }
 0x5a5   :  { %v278_v10 = vadd.f32 %v275_v9, %v138_v8 }
 0x5a7   :  { %v279_v11 = vmul.f32 %v278_v10, %v813_v21 }
 0x5a9   :  { %682 = vtanh.f32 %v279_v11 }
 0x5af   :  { %v683_v13 = vpop.eup %682 }
 0x5b0   :  { %v281_v15 = vmul.f32 %v683_v13, %v813_v21 }
 0x5b2   :  { %v282_v16 = vadd.f32 %v281_v15, %v816_v26 }
 0x5b4   :  { %285 = vrot.lane.b32.xlu0 %v282_v16, %s709_s2  ;;  %v283_v24 = vmul.f32 %v282_v16, %v246_v63 }
 0x5bc   :  { %52 = vperm.xlu0 %669, %v35_v17  }
 0x626   :  { %v286_v19 = vpop.permute.xlu0 %285 }
 0x627   :  { %v288_v20 = vmul.f32 %v286_v19, %v282_v16 }
 0x629   :  { %290 = vrot.lane.b32.xlu1 %v288_v20, %s710_s12 }
 0x62e   :  { %v53_v22 = vpop.permute.xlu0 %52 }
 0x62f   :  { %vm69_vm11 = vcmp.eq.s32.totalorder %v792_v12, %v53_v22 }
 0x630   :  { %v631_v23 = vsel %vm69_vm11, 1.0, %v707_v14 }
 0x631   :  { %639 = vmatmul.msk.f32.gmra.mxu0 %vm90_vm0, %v631_v23 }
 0x69b   :  { %v291_v25 = vpop.permute.xlu1 %290 }
 0x69c   :  { %v293_v27 = vadd.f32 %v291_v25, %v283_v24 }
 0x69e   :  { %684 = vtanh.f32 %v293_v27 }
 0x6a4   :  { %v685_v28 = vpop.eup %684 }
 0x6a5   :  { %296 = vrot.lane.b32.xlu2 %v685_v28, %s709_s2 }
 0x6ae   :  { %v141_v12 = vpop.f32.mrf.mxu0 }
 0x6ff   :  { %v297_v29 = vpop.permute.xlu2 %296 }
 0x700   :  { %v899_v30 = vmul.f32 %v297_v29, %v282_v16 }
 0x702   :  { %301 = vrot.lane.b32.xlu1 %v899_v30, %s710_s12 }
 0x774   :  { %v302_v31 = vpop.permute.xlu1 %301 }
 0x775   :  { %646 = vmatmul.msk.f32.vlgmr.msra.gmra.mxu1 %vm90_vm0, %v302_v31 }
 0x7f2   :  { %v322_v14 = vpop.f32.mrf.mxu1 }
 0x7f3   :  { %v325_v32 = vadd.f32 %v322_v14, %v141_v12 }
 0x7f5   :  { %v326_v33 = vmul.f32 %v325_v32, %v813_v21 }
 0x7f7   :  { %686 = vtanh.f32 %v326_v33 }
 0x7fd   :  { %v687_v34 = vpop.eup %686 }
 0x7fe   :  { %v328_v35 = vmul.f32 %v687_v34, %v813_v21 }
 0x800   :  { %v329_v36 = vadd.f32 %v328_v35, %v816_v26 }
 0x802   :  { %332 = vrot.lane.b32.xlu2 %v329_v36, %s709_s2  ;;  %v330_v40 = vmul.f32 %v329_v36, %v293_v27 }
 0x85c   :  { %v333_v37 = vpop.permute.xlu2 %332 }
 0x85d   :  { %v335_v39 = vmul.f32 %v333_v37, %v329_v36 }
 0x85f   :  { %337 = vrot.lane.b32.xlu0 %v335_v39, %s710_s12 }
 0x8d1   :  { %v338_v41 = vpop.permute.xlu0 %337 }
 0x8d2   :  { %v340_v42 = vadd.f32 %v338_v41, %v330_v40  ;;  %v672_v40 = vld [vmem:[%s1014_s3] ss:$0 sm:$0xff] }
 0x8d4   :  { %688 = vtanh.f32 %v340_v42 }
 0x8da   :  { %v689_v43 = vpop.eup %688 }
 0x8db   :  { %343 = vrot.lane.b32.xlu1 %v689_v43, %s709_s2 }
 0x94d   :  { %v344_v45 = vpop.permute.xlu1 %343 }
 0x94e   :  { %v910_v46 = vmul.f32 %v344_v45, %v329_v36 }
 0x950   :  { %348 = vrot.lane.b32.xlu2 %v910_v46, %s710_s12 }
 0x9aa   :  { %v349_v47 = vpop.permute.xlu2 %348 }
 0x9ab   :  { %647 = vmatmul.msk.f32.vlgmr.msra.gmra.mxu2 %vm90_vm0, %v349_v47 }
 0xa2e   :  { %v369_v48 = vpop.f32.mrf.mxu2 }
 0xa2f   :  { %v372_v49 = vadd.f32 %v369_v48, %v809_v18 }
 0xa31   :  { %v373_v50 = vmul.f32 %v372_v49, %v813_v21 }
 0xa33   :  { %690 = vtanh.f32 %v373_v50 }
 0xa39   :  { %v691_v51 = vpop.eup %690 }
 0xa3a   :  { %v375_v52 = vmul.f32 %v691_v51, %v813_v21 }
 0xa3c   :  { %v376_v53 = vadd.f32 %v375_v52, %v816_v26 }
 0xa3e   :  { %379 = vrot.lane.b32.xlu0 %v376_v53, %s709_s2  ;;  %v377_v56 = vmul.f32 %v376_v53, %v340_v42 }
 0xab0   :  { %v380_v54 = vpop.permute.xlu0 %379 }
 0xab1   :  { %v382_v55 = vmul.f32 %v380_v54, %v376_v53 }
 0xab3   :  { %384 = vrot.lane.b32.xlu1 %v382_v55, %s710_s12 }
 0xb25   :  { %v385_v57 = vpop.permute.xlu1 %384 }
 0xb26   :  { %v387_v58 = vadd.f32 %v385_v57, %v377_v56 }
 0xb28   :  { %692 = vtanh.f32 %v387_v58 }
 0xb2e   :  { %v693_v59 = vpop.eup %692 }
 0xb2f   :  { %390 = vrot.lane.b32.xlu2 %v693_v59, %s709_s2 }
 0xb89   :  { %v391_v18 = vpop.permute.xlu2 %390 }
 0xb8a   :  { %v922_v60 = vmul.f32 %v391_v18, %v376_v53  ;;  %v10_v53 = vstv %s1015_s4 }
 0xb8b   :  { %11 = vst [vmem:[#allocation2] sm:$0x1] %v10_v53 }
 0xb8c   :  { %395 = vrot.lane.b32.xlu0 %v922_v60, %s710_s12 }
 0xbfe   :  { %v396_v61 = vpop.permute.xlu0 %395 }
 0xbff   :  { %648 = vmatmul.msk.f32.vlgmr.msra.gmra.mxu3 %vm90_vm0, %v396_v61 }
 0xc82   :  { %v416_v62 = vpop.f32.mrf.mxu3 }
 0xc83   :  { %v419_v63 = vadd.f32 %v416_v62, %v848_v44  ;;  %v673_v62 = vld [vmem:[#allocation2] ss:$0 sm:$0xff] }
 0xc85   :  { %v420_v0 = vmul.f32 %v419_v63, %v813_v21 }
 0xc87   :  { %694 = vtanh.f32 %v420_v0 }
 0xc8d   :  { %v695_v1 = vpop.eup %694 }
 0xc8e   :  { %v422_v2 = vmul.f32 %v695_v1, %v813_v21 }
 0xc90   :  { %v423_v3 = vadd.f32 %v422_v2, %v816_v26 }
 0xc92   :  { %426 = vrot.lane.b32.xlu1 %v423_v3, %s709_s2  ;;  %v424_v9 = vmul.f32 %v423_v3, %v387_v58 }
 0xd04   :  { %v427_v5 = vpop.permute.xlu1 %426 }
 0xd05   :  { %v429_v8 = vmul.f32 %v427_v5, %v423_v3 }
 0xd07   :  { %431 = vrot.lane.b32.xlu2 %v429_v8, %s710_s12 }
 0xd61   :  { %v432_v10 = vpop.permute.xlu2 %431 }
 0xd62   :  { %v434_v11 = vadd.f32 %v432_v10, %v424_v9 }
 0xd64   :  { %696 = vtanh.f32 %v434_v11 }
 0xd6a   :  { %v697_v13 = vpop.eup %696 }
 0xd6b   :  { %437 = vrot.lane.b32.xlu0 %v697_v13, %s709_s2 }
 0xddd   :  { %v438_v44 = vpop.permute.xlu0 %437 }
 0xdde   :  { %v440_v15 = vmul.f32 %v438_v44, %v423_v3 }
 0xde0   :  { %442 = vrot.lane.b32.xlu1 %v440_v15, %s710_s12 }
 0xe52   :  { %v443_v16 = vpop.permute.xlu1 %442 }
 0xe53   :  { %649 = vmatmul.msk.f32.vlgmr.msrb.gmra.mxu1 %vm90_vm0, %v443_v16 }
 0xed0   :  { %v463_v17 = vpop.f32.mrf.mxu1 }
 0xed1   :  { %v466_v19 = vadd.f32 %v463_v17, %v883_v6 }
 0xed3   :  { %v467_v20 = vmul.f32 %v466_v19, %v813_v21 }
 0xed5   :  { %698 = vtanh.f32 %v467_v20 }
 0xedb   :  { %v699_v22 = vpop.eup %698 }
 0xedc   :  { %v469_v23 = vmul.f32 %v699_v22, %v813_v21 }
 0xede   :  { %v470_v24 = vadd.f32 %v469_v23, %v816_v26 }
 0xee0   :  { %473 = vrot.lane.b32.xlu2 %v470_v24, %s709_s2  ;;  %v471_v28 = vmul.f32 %v470_v24, %v434_v11 }
 0xf3a   :  { %v474_v25 = vpop.permute.xlu2 %473 }
 0xf3b   :  { %v476_v27 = vmul.f32 %v474_v25, %v470_v24 }
 0xf3d   :  { %478 = vrot.lane.b32.xlu0 %v476_v27, %s710_s12 }
 0xfaf   :  { %v479_v29 = vpop.permute.xlu0 %478 }
 0xfb0   :  { %v481_v31 = vadd.f32 %v479_v29, %v471_v28 }
 0xfb2   :  { %700 = vtanh.f32 %v481_v31 }
 0xfb8   :  { %v701_v12 = vpop.eup %700 }
 0xfb9   :  { %484 = vrot.lane.b32.xlu1 %v701_v12, %s709_s2 }
0x102b   :  { %v485_v6 = vpop.permute.xlu1 %484 }
0x102c   :  { %v487_v14 = vmul.f32 %v485_v6, %v470_v24 }
0x102e   :  { %489 = vrot.lane.b32.xlu2 %v487_v14, %s710_s12 }
0x1088   :  { %v490_v32 = vpop.permute.xlu2 %489 }
0x1089   :  { %650 = vmatmul.msk.f32.vlgmr.msrb.gmra.mxu2 %vm90_vm0, %v490_v32 }
0x110c   :  { %v510_v33 = vpop.f32.mrf.mxu2 }
0x110d   :  { %v513_v34 = vadd.f32 %v510_v33, %v885_v7 }
0x110f   :  { %v514_v35 = vmul.f32 %v513_v34, %v813_v21 }
0x1111   :  { %702 = vtanh.f32 %v514_v35 }
0x1117   :  { %v703_v36 = vpop.eup %702 }
0x1118   :  { %v516_v37 = vmul.f32 %v703_v36, %v813_v21 }
0x111a   :  { %v517_v39 = vadd.f32 %v516_v37, %v816_v26 }
0x111c   :  { %520 = vrot.lane.b32.xlu0 %v517_v39, %s709_s2  ;;  %v518_v48 = vmul.f32 %v517_v39, %v481_v31 }
0x1124   :  { %537 = vrot.lane.b32.xlu0 %v672_v40, %s711_s26 }
0x118e   :  { %v521_v41 = vpop.permute.xlu0 %520 }
0x118f   :  { %v523_v42 = vmul.f32 %v521_v41, %v517_v39 }
0x1191   :  { %525 = vrot.lane.b32.xlu1 %v523_v42, %s710_s12 }
0x1196   :  { %v538_v7 = vpop.permute.xlu0 %537 }
0x1197   :  { %v542_v43 = vmul.f32 %v538_v7, %v899_v30  ;;  %v540_v45 = vmul.f32 %v538_v7, %v829_v38  ;;  %v545_v21 = vmul.f32 %v538_v7, %v440_v15  ;;  %v543_v26 = vmul.f32 %v538_v7, %v910_v46 }
0x1198   :  { %v546_v47 = vmul.f32 %v538_v7, %v487_v14  ;;  %v541_v46 = vmul.f32 %v538_v7, %v878_v4  ;;  %v544_v52 = vmul.f32 %v538_v7, %v922_v60 }
0x1199   :  { %560 = vrot.lane.b32.xlu0 %v542_v43, %s710_s12  ;;  %556 = vrot.lane.b32.xlu1 %v540_v45, %s710_s12 }
0x11a1   :  { %566 = vrot.lane.b32.xlu0 %v545_v21, %s710_s12  ;;  %562 = vrot.lane.b32.xlu1 %v543_v26, %s710_s12 }
0x11a9   :  { %568 = vrot.lane.b32.xlu1 %v546_v47, %s710_s12 }
0x1203   :  { %v526_v49 = vpop.permute.xlu1 %525 }
0x1204   :  { %v528_v50 = vadd.f32 %v526_v49, %v518_v48 }
0x1206   :  { %704 = vtanh.f32 %v528_v50 }
0x120b   :  { %v557_v30 = vpop.permute.xlu1 %556  ;;  %v561_v57 = vpop.permute.xlu0 %560 }
0x120c   :  { %v705_v38 = vpop.eup %704  ;;  %v580_v51 = vsel %vm90_vm0, %v557_v30, 0.0  ;;  %v586_v1 = vsel %vm90_vm0, %v561_v57, 0.0 }
0x120d   :  { %581 = vadd.xlane.f32.xlu0 %v580_v51  ;;  %531 = vrot.lane.b32.xlu2 %v705_v38, %s709_s2 }
0x1213   :  { %v567_v59 = vpop.permute.xlu0 %566  ;;  %v563_v2 = vpop.permute.xlu1 %562 }
0x1214   :  { %v595_v60 = vsel %vm90_vm0, %v567_v59, 0.0  ;;  %v589_v3 = vsel %vm90_vm0, %v563_v2, 0.0 }
0x1215   :  { %558 = vrot.lane.b32.xlu2 %v541_v46, %s710_s12 }
0x121b   :  { %v569_v5 = vpop.permute.xlu1 %568 }
0x121c   :  { %v598_v8 = vsel %vm90_vm0, %v569_v5, 0.0 }
0x121d   :  { %564 = vrot.lane.b32.xlu2 %v544_v52, %s710_s12 }
0x1267   :  { %v532_v54 = vpop.permute.xlu2 %531 }
0x1268   :  { %v534_v55 = vmul.f32 %v532_v54, %v517_v39 }
0x126a   :  { %v547_v56 = vmul.f32 %v538_v7, %v534_v55 }
0x126c   :  { %570 = vrot.lane.b32.xlu2 %v547_v56, %s710_s12 }
0x126f   :  { %v559_v58 = vpop.permute.xlu2 %558 }
0x1270   :  { %v583_v4 = vsel %vm90_vm0, %v559_v58, 0.0 }
0x1271   :  { %584 = vadd.xlane.f32.xlu1 %v583_v4 }
0x1277   :  { %v565_v18 = vpop.permute.xlu2 %564 }
0x1278   :  { %v592_v61 = vsel %vm90_vm0, %v565_v18, 0.0 }
0x1279   :  { %596 = vadd.xlane.f32.xlu1 %v595_v60  ;;  %593 = vadd.xlane.f32.xlu0 %v592_v61 }
0x1280   :  { %v582_v63 = vpop.xlane.xlu0 %581 }
0x1281   :  { %v607_v0 = vadd.f32 %v673_v62, %v582_v63 }
0x1283   :  { %616 = vst.msk [vmem:[%s1016_s5] sm:$0xff] %vm615_vm12, %v607_v0 }
0x1295   :  { %587 = vadd.xlane.f32.xlu2 %v586_v1 }
0x129d   :  { %590 = vadd.xlane.f32.xlu2 %v589_v3 }
0x12a5   :  { %599 = vadd.xlane.f32.xlu2 %v598_v8 }
0x12c6   :  { %v571_v9 = vpop.permute.xlu2 %570 }
0x12c7   :  { %v601_v10 = vsel %vm90_vm0, %v571_v9, 0.0 }
0x12c8   :  { %602 = vadd.xlane.f32.xlu0 %v601_v10 }
0x12e4   :  { %v585_v11 = vpop.xlane.xlu1 %584 }
0x12e5   :  { %v608_v13 = vadd.f32 %v673_v62, %v585_v11 }
0x12e7   :  { %617 = vst.msk [vmem:[%s1016_s5 + $0x8] sm:$0xff] %vm615_vm12, %v608_v13 }
0x12ec   :  { %v597_v44 = vpop.xlane.xlu1 %596  ;;  %v594_v15 = vpop.xlane.xlu0 %593 }
0x12ed   :  { %v612_v16 = vadd.f32 %v673_v62, %v597_v44  ;;  %v611_v17 = vadd.f32 %v673_v62, %v594_v15 }
0x12ef   :  { %621 = vst.msk [vmem:[%s1016_s5 + $0x28] sm:$0xff] %vm615_vm12, %v612_v16 }
0x12f0   :  { %620 = vst.msk [vmem:[%s1016_s5 + $0x20] sm:$0xff] %vm615_vm12, %v611_v17 }
0x1308   :  { %v588_v19 = vpop.xlane.xlu2 %587 }
0x1309   :  { %v609_v20 = vadd.f32 %v673_v62, %v588_v19 }
0x130b   :  { %618 = vst.msk [vmem:[%s1016_s5 + $0x10] sm:$0xff] %vm615_vm12, %v609_v20 }
0x1310   :  { %v591_v22 = vpop.xlane.xlu2 %590 }
0x1311   :  { %v610_v23 = vadd.f32 %v673_v62, %v591_v22 }
0x1313   :  { %619 = vst.msk [vmem:[%s1016_s5 + $0x18] sm:$0xff] %vm615_vm12, %v610_v23 }
0x1318   :  { %v600_v24 = vpop.xlane.xlu2 %599 }
0x1319   :  { %v613_v25 = vadd.f32 %v673_v62, %v600_v24 }
0x131b   :  { %622 = vst.msk [vmem:[%s1016_s5 + $0x30] sm:$0xff] %vm615_vm12, %v613_v25 }
0x133b   :  { %v603_v27 = vpop.xlane.xlu0 %602 }
0x133c   :  { %v614_v28 = vadd.f32 %v673_v62, %v603_v27 }
0x133e   :  { %623 = vst.msk [vmem:[%s1016_s5 + $0x38] sm:$0xff] %vm615_vm12, %v614_v28 }

</bundles_post_ra>
